<compile_context>
chip_gen: v6e
topology: v6e:2x2x1
jax: 0.10.0
libtpu: 0.0.40
codegen_flags: <defaults>
</compile_context>

<pallas_src>
import functools

import jax
import jax.numpy as jnp
from jax import lax
from jax.experimental import pallas as pl
from jax.experimental.pallas import tpu as pltpu

EPS = 1e-5
_INV_SQRT2 = 0.7071067811865476


def _v2a_mapper_kernel(x_ref, w1_ref, b1_ref, w2_ref, b2_ref, g_ref, beta_ref, o_ref):
    # x_ref:    (tm, E)   batch tile of image embeddings
    # w1_ref:   (H, E)    first Linear weight (PyTorch layout, not transposed)
    # b1_ref:   (1, H)
    # w2_ref:   (D, H)    second Linear weight (PyTorch layout, not transposed)
    # b2_ref:   (1, D)
    # g_ref:    (1, D)    LayerNorm gamma
    # beta_ref: (1, D)    LayerNorm beta
    # o_ref:    (tm, D)
    x = x_ref[...]

    # ---- Linear 1: (tm, E) x (H, E) contracted on E -> (tm, H), f32 accumulate on MXU.
    h = lax.dot_general(
        x, w1_ref[...],
        dimension_numbers=(((1,), (1,)), ((), ())),
        preferred_element_type=jnp.float32,
    ) + b1_ref[...].astype(jnp.float32)

    # ---- Exact GELU (erf form; matches torch.nn.GELU(approximate='none')).
    h = 0.5 * h * (1.0 + lax.erf(h * _INV_SQRT2))

    # ---- Linear 2: (tm, H) x (D, H) contracted on H -> (tm, D), f32 accumulate.
    y = lax.dot_general(
        h.astype(w2_ref.dtype), w2_ref[...],
        dimension_numbers=(((1,), (1,)), ((), ())),
        preferred_element_type=jnp.float32,
    ) + b2_ref[...].astype(jnp.float32)

    # ---- LayerNorm over D: two independent lane reductions, gamma folded into scale.
    d = y.shape[-1]
    inv_d = 1.0 / d
    s1 = jnp.sum(y, axis=-1, keepdims=True)
    s2 = jnp.sum(y * y, axis=-1, keepdims=True)
    mean = s1 * inv_d
    var = s2 * inv_d - mean * mean
    rstd = lax.rsqrt(var + EPS)
    out = (y - mean) * (g_ref[...].astype(jnp.float32) * rstd) + beta_ref[...].astype(jnp.float32)

    o_ref[...] = out.astype(o_ref.dtype)


def _pick_batch_tile(batch):
    for tm in (256, 128, 64, 32, 16, 8):
        if batch % tm == 0:
            return tm
    return batch


@functools.partial(jax.jit, static_argnames=())
def v2a_mapper_mlp(image_embeds, w1, b1, w2, b2, gamma, beta):
    """image_embeds: (B, E); w1: (H, E); b1: (H,); w2: (D, H); b2: (D,);
    gamma/beta: (D,). Returns (B, D)."""
    B, E = image_embeds.shape
    H = w1.shape[0]
    D = w2.shape[0]

    tm = _pick_batch_tile(B)
    grid = (B // tm,)

    b1_2 = b1.reshape(1, H)
    b2_2 = b2.reshape(1, D)
    g2 = gamma.reshape(1, D)
    beta2 = beta.reshape(1, D)

    # VMEM budget: every input block double-buffered; clamp for v5e (raise the
    # 16 MiB scoped default) and v7x (64 MiB physical per TensorCore).
    blk_bytes = 2 * (
        tm * E * image_embeds.dtype.itemsize
        + w1.size * w1.dtype.itemsize
        + w2.size * w2.dtype.itemsize
        + (H + 3 * D) * b1.dtype.itemsize
        + tm * D * image_embeds.dtype.itemsize
    ) + (4 << 20)
    vmem_limit = int(min(max(blk_bytes, 32 << 20), 64 << 20))

    cost = pl.CostEstimate(
        flops=2 * B * E * H + 2 * B * H * D,
        transcendentals=B * H,  # erf in the GELU
        bytes_accessed=(
            image_embeds.size * image_embeds.dtype.itemsize
            + w1.size * w1.dtype.itemsize
            + w2.size * w2.dtype.itemsize
            + (H + 3 * D) * b1.dtype.itemsize
            + B * D * image_embeds.dtype.itemsize
        ),
    )

    return pl.pallas_call(
        _v2a_mapper_kernel,
        out_shape=jax.ShapeDtypeStruct((B, D), image_embeds.dtype),
        grid_spec=pltpu.PrefetchScalarGridSpec(
            num_scalar_prefetch=0,
            grid=grid,
            in_specs=[
                pl.BlockSpec((tm, E), lambda i: (i, 0)),   # x batch tile
                pl.BlockSpec((H, E), lambda i: (0, 0)),    # W1 (full, PyTorch layout)
                pl.BlockSpec((1, H), lambda i: (0, 0)),    # b1
                pl.BlockSpec((D, H), lambda i: (0, 0)),    # W2 (full, PyTorch layout)
                pl.BlockSpec((1, D), lambda i: (0, 0)),    # b2
                pl.BlockSpec((1, D), lambda i: (0, 0)),    # gamma
                pl.BlockSpec((1, D), lambda i: (0, 0)),    # beta
            ],
            out_specs=pl.BlockSpec((tm, D), lambda i: (i, 0)),
        ),
        compiler_params=pltpu.CompilerParams(
            dimension_semantics=("parallel",),
            vmem_limit_bytes=vmem_limit,
        ),
        cost_estimate=cost,
    )(image_embeds, w1, b1_2, w2, b2_2, g2, beta2)


def _reference(x, w1, b1, w2, b2, gamma, beta):
    h = x.astype(jnp.float32) @ w1.T.astype(jnp.float32) + b1
    h = 0.5 * h * (1.0 + lax.erf(h * _INV_SQRT2))
    y = h @ w2.T.astype(jnp.float32) + b2
    mean = jnp.mean(y, axis=-1, keepdims=True)
    var = jnp.mean((y - mean) ** 2, axis=-1, keepdims=True)
    return ((y - mean) / jnp.sqrt(var + EPS) * gamma + beta).astype(x.dtype)


if __name__ == "__main__":
    # Small shapes consistent with the module (scaled down from 512/2048).
    B = 8            # batch of image embeddings
    E = 128          # clip_embeddings_dim
    MULT = 4
    H = E * MULT     # hidden dim of the MLP
    D = 128          # cross_attention_dim

    key = jax.random.PRNGKey(0)
    k_x, k_w1, k_b1, k_w2, k_b2 = jax.random.split(key, 5)

    image_embeds = jax.random.normal(k_x, (B, E), dtype=jnp.float32)
    # nn.Linear parameter layouts: W (out, in), b (out,).
    w1 = jax.random.normal(k_w1, (H, E), dtype=jnp.float32) * (1.0 / jnp.sqrt(E))
    b1 = jax.random.normal(k_b1, (H,), dtype=jnp.float32) * 0.02
    w2 = jax.random.normal(k_w2, (D, H), dtype=jnp.float32) * (1.0 / jnp.sqrt(H))
    b2 = jax.random.normal(k_b2, (D,), dtype=jnp.float32) * 0.02
    # nn.LayerNorm default affine init.
    gamma = jnp.ones((D,), dtype=jnp.float32)
    beta = jnp.zeros((D,), dtype=jnp.float32)

    out = v2a_mapper_mlp(image_embeds, w1, b1, w2, b2, gamma, beta)
    out = jax.block_until_ready(out)

    ref = _reference(image_embeds, w1, b1, w2, b2, gamma, beta)
    assert out.shape == (B, D)
    assert jnp.allclose(out, ref, atol=1e-4, rtol=1e-4)

    print("KERNEL_OK")
</pallas_src>

<mosaic_0001>
module attributes {stable_mosaic.version = 11 : i64} {
  func.func @_v2a_mapper_kernel(%arg0: i32, %arg1: memref<8x128xf32, #tpu.memory_space<vmem>>, %arg2: memref<512x128xf32, #tpu.memory_space<vmem>>, %arg3: memref<1x512xf32, #tpu.memory_space<vmem>>, %arg4: memref<128x512xf32, #tpu.memory_space<vmem>>, %arg5: memref<1x128xf32, #tpu.memory_space<vmem>>, %arg6: memref<1x128xf32, #tpu.memory_space<vmem>>, %arg7: memref<1x128xf32, #tpu.memory_space<vmem>>, %arg8: memref<8x128xf32, #tpu.memory_space<vmem>>) attributes {dimension_semantics = [#tpu.dimension_semantics<parallel>], iteration_bounds = array<i64: 1>, scalar_prefetch = 0 : i64, scratch_operands = 0 : i64, tpu.core_type = #tpu.core_type<tc>, window_params = [{transform_indices = @transform_0, window_bounds = array<i64: 8, 128>}, {pipeline_mode = #tpu.pipeline_mode<synchronous>, transform_indices = @transform_1, window_bounds = array<i64: 512, 128>}, {pipeline_mode = #tpu.pipeline_mode<synchronous>, transform_indices = @transform_2, window_bounds = array<i64: 1, 512>}, {pipeline_mode = #tpu.pipeline_mode<synchronous>, transform_indices = @transform_3, window_bounds = array<i64: 128, 512>}, {pipeline_mode = #tpu.pipeline_mode<synchronous>, transform_indices = @transform_4, window_bounds = array<i64: 1, 128>}, {pipeline_mode = #tpu.pipeline_mode<synchronous>, transform_indices = @transform_5, window_bounds = array<i64: 1, 128>}, {pipeline_mode = #tpu.pipeline_mode<synchronous>, transform_indices = @transform_6, window_bounds = array<i64: 1, 128>}, {transform_indices = @transform_7, window_bounds = array<i64: 8, 128>}]} {
    %c0 = arith.constant 0 : index
    %c0_0 = arith.constant 0 : index
    %0 = vector.load %arg1[%c0, %c0_0] : memref<8x128xf32, #tpu.memory_space<vmem>>, vector<8x128xf32>
    %c0_1 = arith.constant 0 : index
    %c0_2 = arith.constant 0 : index
    %1 = vector.load %arg2[%c0_1, %c0_2] : memref<512x128xf32, #tpu.memory_space<vmem>>, vector<512x128xf32>
    %cst = arith.constant dense<0.000000e+00> : vector<8x512xf32>
    %2 = tpu.matmul %0, %1, %cst {dimension_numbers = #tpu.dot_dimension_numbers<[1], [1], [0], [0], [0, 0, 1, 0], [], []>} : vector<8x128xf32>, vector<512x128xf32>, vector<8x512xf32> -> vector<8x512xf32>
    %c0_3 = arith.constant 0 : index
    %c0_4 = arith.constant 0 : index
    %3 = vector.load %arg3[%c0_3, %c0_4] : memref<1x512xf32, #tpu.memory_space<vmem>>, vector<1x512xf32>
    %4 = vector.broadcast %3 : vector<1x512xf32> to vector<8x512xf32>
    %5 = arith.addf %2, %4 : vector<8x512xf32>
    %cst_5 = arith.constant 5.000000e-01 : f32
    %6 = vector.broadcast %cst_5 : f32 to vector<8x512xf32>
    %7 = arith.mulf %6, %5 : vector<8x512xf32>
    %cst_6 = arith.constant 0.707106769 : f32
    %8 = vector.broadcast %cst_6 : f32 to vector<8x512xf32>
    %9 = arith.mulf %5, %8 : vector<8x512xf32>
    %10 = math.erf %9 : vector<8x512xf32>
    %cst_7 = arith.constant 1.000000e+00 : f32
    %11 = vector.broadcast %cst_7 : f32 to vector<8x512xf32>
    %12 = arith.addf %11, %10 : vector<8x512xf32>
    %13 = arith.mulf %7, %12 : vector<8x512xf32>
    %c0_8 = arith.constant 0 : index
    %c0_9 = arith.constant 0 : index
    %14 = vector.load %arg4[%c0_8, %c0_9] : memref<128x512xf32, #tpu.memory_space<vmem>>, vector<128x512xf32>
    %cst_10 = arith.constant dense<0.000000e+00> : vector<8x128xf32>
    %15 = tpu.matmul %13, %14, %cst_10 {dimension_numbers = #tpu.dot_dimension_numbers<[1], [1], [0], [0], [0, 0, 1, 0], [], []>} : vector<8x512xf32>, vector<128x512xf32>, vector<8x128xf32> -> vector<8x128xf32>
    %c0_11 = arith.constant 0 : index
    %c0_12 = arith.constant 0 : index
    %16 = vector.load %arg5[%c0_11, %c0_12] : memref<1x128xf32, #tpu.memory_space<vmem>>, vector<1x128xf32>
    %17 = vector.broadcast %16 : vector<1x128xf32> to vector<8x128xf32>
    %18 = arith.addf %15, %17 : vector<8x128xf32>
    %cst_13 = arith.constant dense<0.000000e+00> : vector<8xf32>
    %19 = vector.multi_reduction <add>, %18, %cst_13 [1] : vector<8x128xf32> to vector<8xf32>
    %20 = vector.shape_cast %19 : vector<8xf32> to vector<8x1xf32>
    %21 = arith.mulf %18, %18 : vector<8x128xf32>
    %cst_14 = arith.constant dense<0.000000e+00> : vector<8xf32>
    %22 = vector.multi_reduction <add>, %21, %cst_14 [1] : vector<8x128xf32> to vector<8xf32>
    %23 = vector.shape_cast %22 : vector<8xf32> to vector<8x1xf32>
    %cst_15 = arith.constant 7.812500e-03 : f32
    %24 = vector.broadcast %cst_15 : f32 to vector<8x1xf32>
    %25 = arith.mulf %20, %24 : vector<8x1xf32>
    %cst_16 = arith.constant 7.812500e-03 : f32
    %26 = vector.broadcast %cst_16 : f32 to vector<8x1xf32>
    %27 = arith.mulf %23, %26 : vector<8x1xf32>
    %28 = arith.mulf %25, %25 : vector<8x1xf32>
    %29 = arith.subf %27, %28 : vector<8x1xf32>
    %cst_17 = arith.constant 9.99999974E-6 : f32
    %30 = vector.broadcast %cst_17 : f32 to vector<8x1xf32>
    %31 = arith.addf %29, %30 : vector<8x1xf32>
    %32 = math.rsqrt %31 : vector<8x1xf32>
    %33 = vector.broadcast %25 : vector<8x1xf32> to vector<8x128xf32>
    %34 = arith.subf %18, %33 : vector<8x128xf32>
    %c0_18 = arith.constant 0 : index
    %c0_19 = arith.constant 0 : index
    %35 = vector.load %arg6[%c0_18, %c0_19] : memref<1x128xf32, #tpu.memory_space<vmem>>, vector<1x128xf32>
    %36 = vector.broadcast %35 : vector<1x128xf32> to vector<8x128xf32>
    %37 = vector.broadcast %32 : vector<8x1xf32> to vector<8x128xf32>
    %38 = arith.mulf %36, %37 : vector<8x128xf32>
    %39 = arith.mulf %34, %38 : vector<8x128xf32>
    %c0_20 = arith.constant 0 : index
    %c0_21 = arith.constant 0 : index
    %40 = vector.load %arg7[%c0_20, %c0_21] : memref<1x128xf32, #tpu.memory_space<vmem>>, vector<1x128xf32>
    %41 = vector.broadcast %40 : vector<1x128xf32> to vector<8x128xf32>
    %42 = arith.addf %39, %41 : vector<8x128xf32>
    %c0_22 = arith.constant 0 : index
    %c0_23 = arith.constant 0 : index
    %43 = vector.load %arg8[%c0_22, %c0_23] : memref<8x128xf32, #tpu.memory_space<vmem>>, vector<8x128xf32>
    tpu.vector_store %arg8[%c0_22, %c0_23], %42 {strides = array<i32>} : memref<8x128xf32, #tpu.memory_space<vmem>>, vector<8x128xf32>,
    return
  }
  func.func @transform_0(%arg0: i32) -> (i32, i32) {
    %c0_i32 = arith.constant 0 : i32
    %c0_i32_0 = arith.constant 0 : i32
    return %arg0, %c0_i32 : i32, i32
  }
  func.func @transform_1(%arg0: i32) -> (i32, i32) {
    %c0_i32 = arith.constant 0 : i32
    %c0_i32_0 = arith.constant 0 : i32
    %c0_i32_1 = arith.constant 0 : i32
    return %c0_i32, %c0_i32_0 : i32, i32
  }
  func.func @transform_2(%arg0: i32) -> (i32, i32) {
    %c0_i32 = arith.constant 0 : i32
    %c0_i32_0 = arith.constant 0 : i32
    %c0_i32_1 = arith.constant 0 : i32
    return %c0_i32, %c0_i32_0 : i32, i32
  }
  func.func @transform_3(%arg0: i32) -> (i32, i32) {
    %c0_i32 = arith.constant 0 : i32
    %c0_i32_0 = arith.constant 0 : i32
    %c0_i32_1 = arith.constant 0 : i32
    return %c0_i32, %c0_i32_0 : i32, i32
  }
  func.func @transform_4(%arg0: i32) -> (i32, i32) {
    %c0_i32 = arith.constant 0 : i32
    %c0_i32_0 = arith.constant 0 : i32
    %c0_i32_1 = arith.constant 0 : i32
    return %c0_i32, %c0_i32_0 : i32, i32
  }
  func.func @transform_5(%arg0: i32) -> (i32, i32) {
    %c0_i32 = arith.constant 0 : i32
    %c0_i32_0 = arith.constant 0 : i32
    %c0_i32_1 = arith.constant 0 : i32
    return %c0_i32, %c0_i32_0 : i32, i32
  }
  func.func @transform_6(%arg0: i32) -> (i32, i32) {
    %c0_i32 = arith.constant 0 : i32
    %c0_i32_0 = arith.constant 0 : i32
    %c0_i32_1 = arith.constant 0 : i32
    return %c0_i32, %c0_i32_0 : i32, i32
  }
  func.func @transform_7(%arg0: i32) -> (i32, i32) {
    %c0_i32 = arith.constant 0 : i32
    %c0_i32_0 = arith.constant 0 : i32
    return %arg0, %c0_i32 : i32, i32
  }
}

</mosaic_0001>

<bundles_post_ra>
// kernel: v2a_mapper_mlp.1
= control target key start
LH: loop header
LB: loop body
LE: loop exit
PB: predicated region body
PF: predicated region fallthrough
CT: control target
= control target key end

     0   :  { %12 = vsyncpa [#allocation3], 0  ;;  %s825_s0 = inlined_call_operand.hbm [shape: f32[8,128], index: 0, kind: input, shape index: {}]   ;;  %s826_s1 = inlined_call_operand.hbm [shape: f32[512,128], index: 1, kind: input, shape index: {}]   ;;  %s827_s2 = inlined_call_operand.vmem [shape: f32[1,512], index: 2, kind: input, shape index: {}]   ;;  %s828_s3 = inlined_call_operand.hbm [shape: f32[128,512], index: 3, kind: input, shape index: {}]   ;;  %s829_s4 = inlined_call_operand.vmem [shape: f32[1,128], index: 4, kind: input, shape index: {}]   ;;  %s830_s5 = inlined_call_operand.vmem [shape: f32[1,128], index: 5, kind: input, shape index: {}]   ;;  %s831_s6 = inlined_call_operand.vmem [shape: f32[1,128], index: 6, kind: input, shape index: {}]   ;;  %s832_s7 = inlined_call_operand.hbm [shape: f32[8,128], index: 7, kind: output, shape index: {}]  }
   0x1   :  { %13 = vsyncpa [#allocation6], 0 }
   0x2   :  { %14 = vsyncpa [#allocation4], 0  ;;  %s747_s24 = smov [#allocation5]  }
   0x3   :  { %s30_s25 = sshll.u32 %s747_s24, 4  ;;  %s31_s25 = int_to_ptr.vmem [resolvable:$true] %s30_s25 }
   0x4   :  { %s669_s26 = scalar_lea.vmem %s31_s25, 8192  ;;  %p674_p1 = scmp.lt.s32.totalorder %s31_s25, %s31_s25 }
   0x5   :  { %p670_p0 = scmp.ne.s32.totalorder %s31_s25, %s669_s26  ;;  %p675_p2 = scmp.lt.s32.totalorder %s669_s26, %s669_s26 }
   0x7   :  { %p676_p3 = por %p675_p2, %p674_p1 }
   0x9   :  { %p677_p4 = pnand %p676_p3, %p670_p0 }
   0xb   :  { %680 = shalt.err (!%p677_p4)
}
   0xc   :  { %s748_s27 = smov 128   ;;  %s749_s28 = smov 8  }
   0xd   :  { %36 = dma.hbm_to_vmem [thread:$0]  %s826_s1, 8192, %s31_s25, [#allocation6], %s748_s27, %s748_s27, %s749_s28  }
   0xe   :  { %s750_s8 = smov [#allocation2]   ;;  %s751_s10 = smov [#allocation7]  }
   0xf   :  { %s21_s9 = sshll.u32 %s750_s8, 4  ;;  %s44_s11 = sshll.u32 %s751_s10, 4  ;;  %s22_s9 = int_to_ptr.vmem [resolvable:$true] %s21_s9  ;;  %s45_s11 = int_to_ptr.vmem [resolvable:$true] %s44_s11 }
  0x10   :  { %s689_s12 = scalar_lea.vmem %s22_s9, 128  ;;  %p694_p6 = scmp.lt.s32.totalorder %s22_s9, %s22_s9 }
  0x11   :  { %p690_p5 = scmp.ne.s32.totalorder %s22_s9, %s689_s12  ;;  %p695_p7 = scmp.lt.s32.totalorder %s689_s12, %s689_s12 }
  0x13   :  { %p696_p8 = por %p695_p7, %p694_p6 }
  0x15   :  { %p697_p9 = pnand %p696_p8, %p690_p5 }
  0x17   :  { %700 = shalt.err (!%p697_p9)
}
  0x18   :  { %24 = dma.hbm_to_vmem [thread:$0]  %s825_s0, 128, %s22_s9, [#allocation3]  }
  0x19   :  { %s709_s15 = scalar_lea.vmem %s45_s11, 8192  ;;  %p714_p11 = scmp.lt.s32.totalorder %s45_s11, %s45_s11 }
  0x1a   :  { %p710_p10 = scmp.ne.s32.totalorder %s45_s11, %s709_s15  ;;  %p715_p12 = scmp.lt.s32.totalorder %s709_s15, %s709_s15 }
  0x1c   :  { %p716_p13 = por %p715_p12, %p714_p11 }
  0x1e   :  { %p717_p0 = pnand %p716_p13, %p710_p10 }
  0x20   :  { %720 = shalt.err (!%p717_p0)
}
  0x21   :  { %s752_s1 = smov 512   ;;  %s753_s16 = smov 32  }
  0x22   :  { %50 = dma.hbm_to_vmem [thread:$0]  %s828_s3, 8192, %s45_s11, [#allocation6], %s752_s1, %s752_s1, %s753_s16  }
  0x23   :  { %741 = dma.done.wait [#allocation3], 128  }
  0x24   :  { %742 = vsyncadd [#allocation3], 4294967168 }
  0x25   :  { %743 = dma.done.wait [#allocation6], 16384  }
  0x26   :  { %744 = vsyncadd [#allocation6], 4294950912  ;;  %v98_v0 = vld [vmem:[#allocation5 + $0xf8] sm:$0xff]  ;;  %v97_v4 = vld [vmem:[#allocation5 + $0xf0] sm:$0xff]  ;;  %s754_s23 = smov [#allocation8]  }
  0x27   :  { %v130_v1 = vld [vmem:[#allocation5 + $0x1f8] sm:$0xff]  ;;  %575 = vmatprep.subr.mxu0 %v98_v0  ;;  %v129_v5 = vld [vmem:[#allocation5 + $0x1f0] sm:$0xff]  ;;  %v96_v8 = vld [vmem:[#allocation5 + $0xe8] sm:$0xff]  ;;  %s562_s24 = sshll.u32 %s754_s23, 4  ;;  %s563_s24 = int_to_ptr.vmem [resolvable:$true] %s562_s24 }
  0x28   :  { %v82_v2 = vld [vmem:[#allocation5 + $0x78] sm:$0xff]  ;;  %609 = vmatprep.subr.mxu1 %v130_v1  ;;  %v81_v6 = vld [vmem:[#allocation5 + $0x70] sm:$0xff]  ;;  %v128_v9 = vld [vmem:[#allocation5 + $0x1e8] sm:$0xff]  ;;  %s721_s25 = scalar_lea.vmem %s563_s24, 128  ;;  %p726_p2 = scmp.lt.s32.totalorder %s563_s24, %s563_s24 }
  0x29   :  { %v114_v3 = vld [vmem:[#allocation5 + $0x178] sm:$0xff]  ;;  %576 = vmatpush3.xpose.msra.mxu0 %v82_v2  ;;  %v113_v7 = vld [vmem:[#allocation5 + $0x170] sm:$0xff]  ;;  %v80_v10 = vld [vmem:[#allocation5 + $0x68] sm:$0xff]  ;;  %p722_p1 = scmp.ne.s32.totalorder %s563_s24, %s721_s25  ;;  %p727_p3 = scmp.lt.s32.totalorder %s721_s25, %s721_s25 }
  0x2a   :  { %610 = vmatpush3.xpose.msra.mxu1 %v114_v3  ;;  %577 = vmatprep.subr.mxu0 %v97_v4  ;;  %v112_v11 = vld [vmem:[#allocation5 + $0x168] sm:$0xff]  ;;  %v95_v12 = vld [vmem:[#allocation5 + $0xe0] sm:$0xff]  ;;  %v94_v16 = vld [vmem:[#allocation5 + $0xd8] sm:$0xff] }
  0x2b   :  { %611 = vmatprep.subr.mxu1 %v129_v5  ;;  %v127_v13 = vld [vmem:[#allocation5 + $0x1e0] sm:$0xff]  ;;  %v126_v17 = vld [vmem:[#allocation5 + $0x1d8] sm:$0xff]  ;;  %v93_v20 = vld [vmem:[#allocation5 + $0xd0] sm:$0xff]  ;;  %p728_p4 = por %p727_p3, %p726_p2 }
  0x2c   :  { %v79_v14 = vld [vmem:[#allocation5 + $0x60] sm:$0xff]  ;;  %v78_v18 = vld [vmem:[#allocation5 + $0x58] sm:$0xff]  ;;  %v125_v21 = vld [vmem:[#allocation5 + $0x1d0] sm:$0xff] }
  0x2d   :  { %578 = vmatpush3.xpose.msra.mxu0 %v81_v6  ;;  %v111_v15 = vld [vmem:[#allocation5 + $0x160] sm:$0xff]  ;;  %v110_v19 = vld [vmem:[#allocation5 + $0x158] sm:$0xff]  ;;  %v77_v22 = vld [vmem:[#allocation5 + $0x50] sm:$0xff]  ;;  %p729_p5 = pnand %p728_p4, %p722_p1 }
  0x2e   :  { %612 = vmatpush3.xpose.msra.mxu1 %v113_v7  ;;  %579 = vmatprep.subr.mxu0 %v96_v8  ;;  %v109_v23 = vld [vmem:[#allocation5 + $0x150] sm:$0xff]  ;;  %v92_v24 = vld [vmem:[#allocation5 + $0xc8] sm:$0xff]  ;;  %v804_v26 = vld [vmem:[#allocation2] sm:$0xff] }
  0x2f   :  { %613 = vmatprep.subr.mxu1 %v128_v9  ;;  %v124_v25 = vld [vmem:[#allocation5 + $0x1c8] sm:$0xff]  ;;  %v91_v29 = vld [vmem:[#allocation5 + $0xc0] sm:$0xff]  ;;  %607 = vmatprep.mubr.f32.mxu0 %v804_v26  ;;  %v90_v33 = vld [vmem:[#allocation5 + $0xb8] sm:$0xff] }
  0x30   :  { %v76_v27 = vld [vmem:[#allocation5 + $0x48] sm:$0xff]  ;;  %v123_v30 = vld [vmem:[#allocation5 + $0x1c0] sm:$0xff]  ;;  %641 = vmatprep.mubr.f32.mxu1 %v804_v26  ;;  %v122_v34 = vld [vmem:[#allocation5 + $0x1b8] sm:$0xff] }
  0x31   :  { %580 = vmatpush3.xpose.msra.mxu0 %v80_v10  ;;  %v108_v28 = vld [vmem:[#allocation5 + $0x148] sm:$0xff]  ;;  %v75_v31 = vld [vmem:[#allocation5 + $0x40] sm:$0xff]  ;;  %v74_v35 = vld [vmem:[#allocation5 + $0x38] sm:$0xff] }
  0x32   :  { %614 = vmatpush3.xpose.msra.mxu1 %v112_v11  ;;  %581 = vmatprep.subr.mxu0 %v95_v12  ;;  %v107_v32 = vld [vmem:[#allocation5 + $0x140] sm:$0xff]  ;;  %v106_v36 = vld [vmem:[#allocation5 + $0x138] sm:$0xff]  ;;  %v89_v37 = vld [vmem:[#allocation5 + $0xb0] sm:$0xff] }
  0x33   :  { %615 = vmatprep.subr.mxu1 %v127_v13  ;;  %v121_v38 = vld [vmem:[#allocation5 + $0x1b0] sm:$0xff]  ;;  %v88_v41 = vld [vmem:[#allocation5 + $0xa8] sm:$0xff]  ;;  %v87_v45 = vld [vmem:[#allocation5 + $0xa0] sm:$0xff] }
  0x34   :  { %v73_v39 = vld [vmem:[#allocation5 + $0x30] sm:$0xff]  ;;  %v120_v42 = vld [vmem:[#allocation5 + $0x1a8] sm:$0xff]  ;;  %v119_v46 = vld [vmem:[#allocation5 + $0x1a0] sm:$0xff] }
  0x35   :  { %582 = vmatpush3.xpose.msra.mxu0 %v79_v14  ;;  %v105_v40 = vld [vmem:[#allocation5 + $0x130] sm:$0xff]  ;;  %v72_v43 = vld [vmem:[#allocation5 + $0x28] sm:$0xff]  ;;  %v71_v47 = vld [vmem:[#allocation5 + $0x20] sm:$0xff] }
  0x36   :  { %616 = vmatpush3.xpose.msra.mxu1 %v111_v15  ;;  %583 = vmatprep.subr.mxu0 %v94_v16  ;;  %v104_v44 = vld [vmem:[#allocation5 + $0x128] sm:$0xff]  ;;  %v103_v48 = vld [vmem:[#allocation5 + $0x120] sm:$0xff]  ;;  %v86_v49 = vld [vmem:[#allocation5 + $0x98] sm:$0xff] }
  0x37   :  { %617 = vmatprep.subr.mxu1 %v126_v17  ;;  %v118_v50 = vld [vmem:[#allocation5 + $0x198] sm:$0xff]  ;;  %v85_v53 = vld [vmem:[#allocation5 + $0x90] sm:$0xff]  ;;  %v84_v57 = vld [vmem:[#allocation5 + $0x88] sm:$0xff] }
  0x38   :  { %v70_v51 = vld [vmem:[#allocation5 + $0x18] sm:$0xff]  ;;  %v117_v54 = vld [vmem:[#allocation5 + $0x190] sm:$0xff]  ;;  %v116_v58 = vld [vmem:[#allocation5 + $0x188] sm:$0xff] }
  0x39   :  { %584 = vmatpush3.xpose.msra.mxu0 %v78_v18  ;;  %v102_v52 = vld [vmem:[#allocation5 + $0x118] sm:$0xff]  ;;  %v69_v55 = vld [vmem:[#allocation5 + $0x10] sm:$0xff]  ;;  %v68_v59 = vld [vmem:[#allocation5 + $0x8] sm:$0xff] }
  0x3a   :  { %618 = vmatpush3.xpose.msra.mxu1 %v110_v19  ;;  %585 = vmatprep.subr.mxu0 %v93_v20  ;;  %v101_v56 = vld [vmem:[#allocation5 + $0x110] sm:$0xff]  ;;  %v100_v60 = vld [vmem:[#allocation5 + $0x108] sm:$0xff]  ;;  %v83_v61 = vld [vmem:[#allocation5 + $0x80] sm:$0xff] }
  0x3b   :  { %619 = vmatprep.subr.mxu1 %v125_v21  ;;  %v115_v62 = vld [vmem:[#allocation5 + $0x180] sm:$0xff]  ;;  %v376_v1 = vld [vmem:[#allocation7 + $0x1e8] sm:$0xff]  ;;  %v378_v2 = vld [vmem:[#allocation7 + $0x1f8] sm:$0xff] }
  0x3c   :  { %v67_v63 = vld [vmem:[#allocation5] sm:$0xff]  ;;  %v377_v4 = vld [vmem:[#allocation7 + $0x1f0] sm:$0xff]  ;;  %v372_v5 = vld [vmem:[#allocation7 + $0x1c8] sm:$0xff] }
  0x3d   :  { %586 = vmatpush3.xpose.msra.mxu0 %v77_v22  ;;  %v99_v0 = vld [vmem:[#allocation5 + $0x100] sm:$0xff]  ;;  %v374_v6 = vld [vmem:[#allocation7 + $0x1d8] sm:$0xff]  ;;  %v373_v8 = vld [vmem:[#allocation7 + $0x1d0] sm:$0xff] }
  0x3e   :  { %620 = vmatpush3.xpose.msra.mxu1 %v109_v23  ;;  %587 = vmatprep.subr.mxu0 %v92_v24  ;;  %v375_v3 = vld [vmem:[#allocation7 + $0x1e0] sm:$0xff]  ;;  %v368_v9 = vld [vmem:[#allocation7 + $0x1a8] sm:$0xff]  ;;  %v370_v10 = vld [vmem:[#allocation7 + $0x1b8] sm:$0xff] }
  0x3f   :  { %621 = vmatprep.subr.mxu1 %v124_v25  ;;  %v371_v7 = vld [vmem:[#allocation7 + $0x1c0] sm:$0xff]  ;;  %v369_v12 = vld [vmem:[#allocation7 + $0x1b0] sm:$0xff]  ;;  %v364_v13 = vld [vmem:[#allocation7 + $0x188] sm:$0xff] }
  0x40   :  { %v367_v11 = vld [vmem:[#allocation7 + $0x1a0] sm:$0xff]  ;;  %v366_v14 = vld [vmem:[#allocation7 + $0x198] sm:$0xff]  ;;  %v365_v16 = vld [vmem:[#allocation7 + $0x190] sm:$0xff] }
  0x41   :  { %588 = vmatpush3.xpose.msra.mxu0 %v76_v27  ;;  %v363_v15 = vld [vmem:[#allocation7 + $0x180] sm:$0xff]  ;;  %v360_v17 = vld [vmem:[#allocation7 + $0x168] sm:$0xff]  ;;  %v362_v18 = vld [vmem:[#allocation7 + $0x178] sm:$0xff] }
  0x42   :  { %622 = vmatpush3.xpose.msra.mxu1 %v108_v28  ;;  %589 = vmatprep.subr.mxu0 %v91_v29  ;;  %v359_v19 = vld [vmem:[#allocation7 + $0x160] sm:$0xff]  ;;  %v361_v20 = vld [vmem:[#allocation7 + $0x170] sm:$0xff]  ;;  %v356_v21 = vld [vmem:[#allocation7 + $0x148] sm:$0xff] }
  0x43   :  { %623 = vmatprep.subr.mxu1 %v123_v30  ;;  %v358_v22 = vld [vmem:[#allocation7 + $0x158] sm:$0xff]  ;;  %v355_v23 = vld [vmem:[#allocation7 + $0x140] sm:$0xff]  ;;  %v357_v24 = vld [vmem:[#allocation7 + $0x150] sm:$0xff] }
  0x44   :  { %v352_v25 = vld [vmem:[#allocation7 + $0x128] sm:$0xff]  ;;  %v351_v27 = vld [vmem:[#allocation7 + $0x120] sm:$0xff]  ;;  %v353_v28 = vld [vmem:[#allocation7 + $0x130] sm:$0xff] }
  0x45   :  { %590 = vmatpush3.xpose.msra.mxu0 %v75_v31  ;;  %v348_v29 = vld [vmem:[#allocation7 + $0x108] sm:$0xff]  ;;  %v350_v30 = vld [vmem:[#allocation7 + $0x118] sm:$0xff]  ;;  %v347_v31 = vld [vmem:[#allocation7 + $0x100] sm:$0xff] }
  0x46   :  { %624 = vmatpush3.xpose.msra.mxu1 %v107_v32  ;;  %591 = vmatprep.subr.mxu0 %v90_v33  ;;  %v349_v32 = vld [vmem:[#allocation7 + $0x110] sm:$0xff]  ;;  %v344_v33 = vld [vmem:[#allocation7 + $0xe8] sm:$0xff] }
  0x47   :  { %625 = vmatprep.subr.mxu1 %v122_v34  ;;  %v346_v34 = vld [vmem:[#allocation7 + $0xf8] sm:$0xff] }
  0x49   :  { %592 = vmatpush3.xpose.msra.mxu0 %v74_v35  ;;  %v343_v35 = vld [vmem:[#allocation7 + $0xe0] sm:$0xff] }
  0x4a   :  { %626 = vmatpush3.xpose.msra.mxu1 %v106_v36  ;;  %593 = vmatprep.subr.mxu0 %v89_v37  ;;  %v345_v36 = vld [vmem:[#allocation7 + $0xf0] sm:$0xff]  ;;  %v340_v37 = vld [vmem:[#allocation7 + $0xc8] sm:$0xff] }
  0x4b   :  { %627 = vmatprep.subr.mxu1 %v121_v38  ;;  %v342_v38 = vld [vmem:[#allocation7 + $0xd8] sm:$0xff] }
  0x4d   :  { %594 = vmatpush3.xpose.msra.mxu0 %v73_v39  ;;  %v339_v39 = vld [vmem:[#allocation7 + $0xc0] sm:$0xff] }
  0x4e   :  { %628 = vmatpush3.xpose.msra.mxu1 %v105_v40  ;;  %595 = vmatprep.subr.mxu0 %v88_v41  ;;  %v341_v40 = vld [vmem:[#allocation7 + $0xd0] sm:$0xff]  ;;  %v336_v41 = vld [vmem:[#allocation7 + $0xa8] sm:$0xff] }
  0x4f   :  { %629 = vmatprep.subr.mxu1 %v120_v42  ;;  %v338_v42 = vld [vmem:[#allocation7 + $0xb8] sm:$0xff] }
  0x51   :  { %596 = vmatpush3.xpose.msra.mxu0 %v72_v43  ;;  %v335_v43 = vld [vmem:[#allocation7 + $0xa0] sm:$0xff] }
  0x52   :  { %630 = vmatpush3.xpose.msra.mxu1 %v104_v44  ;;  %597 = vmatprep.subr.mxu0 %v87_v45  ;;  %v337_v44 = vld [vmem:[#allocation7 + $0xb0] sm:$0xff]  ;;  %v332_v45 = vld [vmem:[#allocation7 + $0x88] sm:$0xff] }
  0x53   :  { %631 = vmatprep.subr.mxu1 %v119_v46  ;;  %v334_v46 = vld [vmem:[#allocation7 + $0x98] sm:$0xff] }
  0x55   :  { %598 = vmatpush3.xpose.msra.mxu0 %v71_v47  ;;  %v331_v47 = vld [vmem:[#allocation7 + $0x80] sm:$0xff] }
  0x56   :  { %632 = vmatpush3.xpose.msra.mxu1 %v103_v48  ;;  %599 = vmatprep.subr.mxu0 %v86_v49  ;;  %v333_v48 = vld [vmem:[#allocation7 + $0x90] sm:$0xff]  ;;  %v328_v49 = vld [vmem:[#allocation7 + $0x68] sm:$0xff] }
  0x57   :  { %633 = vmatprep.subr.mxu1 %v118_v50  ;;  %v330_v50 = vld [vmem:[#allocation7 + $0x78] sm:$0xff] }
  0x59   :  { %600 = vmatpush3.xpose.msra.mxu0 %v70_v51  ;;  %v327_v51 = vld [vmem:[#allocation7 + $0x60] sm:$0xff] }
  0x5a   :  { %634 = vmatpush3.xpose.msra.mxu1 %v102_v52  ;;  %601 = vmatprep.subr.mxu0 %v85_v53  ;;  %v329_v52 = vld [vmem:[#allocation7 + $0x70] sm:$0xff]  ;;  %v324_v53 = vld [vmem:[#allocation7 + $0x48] sm:$0xff] }
  0x5b   :  { %635 = vmatprep.subr.mxu1 %v117_v54  ;;  %v326_v54 = vld [vmem:[#allocation7 + $0x58] sm:$0xff] }
  0x5d   :  { %602 = vmatpush3.xpose.msra.mxu0 %v69_v55  ;;  %v323_v55 = vld [vmem:[#allocation7 + $0x40] sm:$0xff] }
  0x5e   :  { %636 = vmatpush3.xpose.msra.mxu1 %v101_v56  ;;  %603 = vmatprep.subr.mxu0 %v84_v57  ;;  %v325_v56 = vld [vmem:[#allocation7 + $0x50] sm:$0xff]  ;;  %v320_v57 = vld [vmem:[#allocation7 + $0x28] sm:$0xff] }
  0x5f   :  { %637 = vmatprep.subr.mxu1 %v116_v58  ;;  %v322_v58 = vld [vmem:[#allocation7 + $0x38] sm:$0xff] }
  0x61   :  { %604 = vmatpush3.xpose.msra.mxu0 %v68_v59  ;;  %v319_v59 = vld [vmem:[#allocation7 + $0x20] sm:$0xff] }
  0x62   :  { %638 = vmatpush3.xpose.msra.mxu1 %v100_v60  ;;  %605 = vmatprep.subr.mxu0 %v83_v61  ;;  %v321_v60 = vld [vmem:[#allocation7 + $0x30] sm:$0xff]  ;;  %v316_v61 = vld [vmem:[#allocation7 + $0x8] sm:$0xff] }
  0x63   :  { %639 = vmatprep.subr.mxu1 %v115_v62  ;;  %v318_v62 = vld [vmem:[#allocation7 + $0x18] sm:$0xff] }
  0x65   :  { %606 = vmatpush3.xpose.msra.mxu0 %v67_v63  ;;  %v315_v63 = vld [vmem:[#allocation7] sm:$0xff] }
  0x66   :  { %640 = vmatpush3.xpose.msra.mxu1 %v99_v0  ;;  %386 = vmatprep.subr.mxu0 %v376_v1  ;;  %v317_v0 = vld [vmem:[#allocation7 + $0x10] sm:$0xff]  ;;  %v133_v1 = vlaneseq }
  0x67   :  { %456 = vmatprep.subr.mxu1 %v378_v2 }
  0x68   :  { %608 = vmatmul.mubr.f32.vlgmr.msra.gmra.mxu0 %v804_v26  ;;  %v134_v2 = vshrl.u32 %v133_v1, 7 }
  0x69   :  { %642 = vmatmul.mubr.f32.vlgmr.msra.gmra.mxu1 %v804_v26  ;;  %387 = vmatpush1.xpose.msra.mxu0 %v375_v3  ;;  %v354_v26 = vld [vmem:[#allocation7 + $0x138] sm:$0xff] }
  0x6a   :  { %457 = vmatpush1.xpose.msra.mxu1 %v377_v4  ;;  %388 = vmatprep.subr.mxu0 %v372_v5  ;;  %v135_v3 = vsub.s32 0, %v134_v2  ;;  %v143_v4 = vsub.s32 2, %v134_v2  ;;  %v131_v5 = vld [vmem:[%s827_s2] sm:$0xf] }
  0x6b   :  { %458 = vmatprep.subr.mxu1 %v374_v6  ;;  %v139_v6 = vsub.s32 1, %v134_v2 }
  0x6d   :  { %389 = vmatpush1.xpose.msra.mxu0 %v371_v7  ;;  %v147_v7 = vsub.s32 3, %v134_v2 }
  0x6e   :  { %459 = vmatpush1.xpose.msra.mxu1 %v373_v8  ;;  %390 = vmatprep.subr.mxu0 %v368_v9  ;;  %v136_v8 = vrot.slane %v131_v5, %v135_v3  ;;  %v144_v9 = vrot.slane %v131_v5, %v143_v4 }
  0x6f   :  { %460 = vmatprep.subr.mxu1 %v370_v10 }
  0x71   :  { %391 = vmatpush1.xpose.msra.mxu0 %v367_v11 }
  0x72   :  { %461 = vmatpush1.xpose.msra.mxu1 %v369_v12  ;;  %392 = vmatprep.subr.mxu0 %v364_v13  ;;  %v140_v12 = vrot.slane %v131_v5, %v139_v6  ;;  %v148_v13 = vrot.slane %v131_v5, %v147_v7 }
  0x73   :  { %462 = vmatprep.subr.mxu1 %v366_v14 }
  0x75   :  { %393 = vmatpush1.xpose.msra.mxu0 %v363_v15 }
  0x76   :  { %463 = vmatpush1.xpose.msra.mxu1 %v365_v16  ;;  %394 = vmatprep.subr.mxu0 %v360_v17 }
  0x77   :  { %464 = vmatprep.subr.mxu1 %v362_v18 }
  0x79   :  { %395 = vmatpush1.xpose.msra.mxu0 %v359_v19 }
  0x7a   :  { %465 = vmatpush1.xpose.msra.mxu1 %v361_v20  ;;  %396 = vmatprep.subr.mxu0 %v356_v21 }
  0x7b   :  { %466 = vmatprep.subr.mxu1 %v358_v22 }
  0x7d   :  { %397 = vmatpush1.xpose.msra.mxu0 %v355_v23 }
  0x7e   :  { %467 = vmatpush1.xpose.msra.mxu1 %v357_v24  ;;  %398 = vmatprep.subr.mxu0 %v352_v25 }
  0x7f   :  { %468 = vmatprep.subr.mxu1 %v354_v26 }
  0x81   :  { %399 = vmatpush1.xpose.msra.mxu0 %v351_v27 }
  0x82   :  { %469 = vmatpush1.xpose.msra.mxu1 %v353_v28  ;;  %400 = vmatprep.subr.mxu0 %v348_v29 }
  0x83   :  { %470 = vmatprep.subr.mxu1 %v350_v30 }
  0x85   :  { %401 = vmatpush1.xpose.msra.mxu0 %v347_v31 }
  0x86   :  { %471 = vmatpush1.xpose.msra.mxu1 %v349_v32  ;;  %402 = vmatprep.subr.mxu0 %v344_v33 }
  0x87   :  { %472 = vmatprep.subr.mxu1 %v346_v34 }
  0x89   :  { %403 = vmatpush1.xpose.msra.mxu0 %v343_v35 }
  0x8a   :  { %473 = vmatpush1.xpose.msra.mxu1 %v345_v36  ;;  %404 = vmatprep.subr.mxu0 %v340_v37 }
  0x8b   :  { %474 = vmatprep.subr.mxu1 %v342_v38 }
  0x8d   :  { %405 = vmatpush1.xpose.msra.mxu0 %v339_v39 }
  0x8e   :  { %475 = vmatpush1.xpose.msra.mxu1 %v341_v40  ;;  %406 = vmatprep.subr.mxu0 %v336_v41  ;;  %v572_v40 = vld [vmem:[%s829_s4] ss:$0 sm:$0xff] }
  0x8f   :  { %476 = vmatprep.subr.mxu1 %v338_v42 }
  0x91   :  { %407 = vmatpush1.xpose.msra.mxu0 %v335_v43 }
  0x92   :  { %477 = vmatpush1.xpose.msra.mxu1 %v337_v44  ;;  %408 = vmatprep.subr.mxu0 %v332_v45 }
  0x93   :  { %478 = vmatprep.subr.mxu1 %v334_v46 }
  0x95   :  { %409 = vmatpush1.xpose.msra.mxu0 %v331_v47 }
  0x96   :  { %479 = vmatpush1.xpose.msra.mxu1 %v333_v48  ;;  %410 = vmatprep.subr.mxu0 %v328_v49 }
  0x97   :  { %480 = vmatprep.subr.mxu1 %v330_v50 }
  0x99   :  { %411 = vmatpush1.xpose.msra.mxu0 %v327_v51 }
  0x9a   :  { %481 = vmatpush1.xpose.msra.mxu1 %v329_v52  ;;  %412 = vmatprep.subr.mxu0 %v324_v53 }
  0x9b   :  { %482 = vmatprep.subr.mxu1 %v326_v54 }
  0x9d   :  { %413 = vmatpush1.xpose.msra.mxu0 %v323_v55  ;;  %v573_v55 = vld [vmem:[%s830_s5] ss:$0 sm:$0xff] }
  0x9e   :  { %483 = vmatpush1.xpose.msra.mxu1 %v325_v56  ;;  %414 = vmatprep.subr.mxu0 %v320_v57 }
  0x9f   :  { %484 = vmatprep.subr.mxu1 %v322_v58 }
  0xa1   :  { %415 = vmatpush1.xpose.msra.mxu0 %v319_v59  ;;  %v574_v59 = vld [vmem:[%s831_s6] ss:$0 sm:$0xff] }
  0xa2   :  { %485 = vmatpush1.xpose.msra.mxu1 %v321_v60  ;;  %416 = vmatprep.subr.mxu0 %v316_v61 }
  0xa3   :  { %486 = vmatprep.subr.mxu1 %v318_v62 }
  0xa5   :  { %417 = vmatpush1.xpose.msra.mxu0 %v315_v63 }
  0xa6   :  { %487 = vmatpush1.xpose.msra.mxu1 %v317_v0 }
 0x128   :  { %v219_v10 = vpop.f32.mrf.mxu0 }
 0x129   :  { %v290_v11 = vpop.f32.mrf.mxu1  ;;  %v220_v14 = vadd.f32 %v219_v10, %v136_v8 }
 0x12a   :  { %v291_v15 = vadd.f32 %v290_v11, %v144_v9  ;;  %v221_v16 = vpop.f32.mrf.mxu0 }
 0x12b   :  { %v292_v17 = vpop.f32.mrf.mxu1  ;;  %v299_v18 = vmul.f32 0.70710677, %v220_v14  ;;  %v222_v20 = vadd.f32 %v221_v16, %v140_v12  ;;  %v295_v32 = vmul.f32 0.5, %v220_v14 }
 0x12c   :  { %v301_v19 = vmul.f32 0.70710677, %v291_v15  ;;  %v293_v21 = vadd.f32 %v292_v17, %v148_v13  ;;  %v297_v35 = vmul.f32 0.5, %v291_v15 }
 0x12d   :  { %651 = verf.f32 %v299_v18  ;;  %v300_v22 = vmul.f32 0.70710677, %v222_v20  ;;  %v296_v30 = vmul.f32 0.5, %v222_v20 }
 0x12e   :  { %653 = verf.f32 %v301_v19  ;;  %v302_v23 = vmul.f32 0.70710677, %v293_v21  ;;  %v298_v33 = vmul.f32 0.5, %v293_v21 }
 0x12f   :  { %655 = verf.f32 %v300_v22 }
 0x130   :  { %657 = verf.f32 %v302_v23 }
 0x13a   :  { %v652_v24 = vpop.eup %651 }
 0x13b   :  { %v654_v25 = vpop.eup %653  ;;  %v307_v27 = vadd.f32 1.0, %v652_v24 }
 0x13c   :  { %v656_v26 = vpop.eup %655  ;;  %v309_v29 = vadd.f32 1.0, %v654_v25 }
 0x13d   :  { %v658_v28 = vpop.eup %657  ;;  %v308_v31 = vadd.f32 1.0, %v656_v26  ;;  %v311_v37 = vmul.f32 %v307_v27, %v295_v32 }
 0x13e   :  { %v310_v34 = vadd.f32 1.0, %v658_v28  ;;  %v313_v39 = vmul.f32 %v309_v29, %v297_v35 }
 0x13f   :  { %v312_v36 = vmul.f32 %v308_v31, %v296_v30 }
 0x140   :  { %v314_v38 = vmul.f32 %v310_v34, %v298_v33 }
 0x141   :  { %450 = vmatprep.mubr.f32.mxu0 %v312_v36 }
 0x142   :  { %520 = vmatprep.mubr.f32.mxu1 %v314_v38  ;;  %451 = vmatmul.mubr.f32.vlgmr.msra.gmra.mxu0 %v311_v37 }
 0x143   :  { %521 = vmatmul.mubr.f32.vlgmr.msra.gmra.mxu1 %v313_v39 }
 0x202   :  { %v452_v41 = vpop.f32.mrf.mxu0 }
 0x203   :  { %v453_v42 = vadd.f32 %v572_v40, %v452_v41  ;;  %v522_v43 = vpop.f32.mrf.mxu1 }
 0x204   :  { %v454_v44 = vpop.f32.mrf.mxu0 }
 0x205   :  { %v523_v45 = vadd.f32 %v522_v43, %v453_v42  ;;  %v524_v46 = vpop.f32.mrf.mxu1 }
 0x207   :  { %526 = vadd.xlane.f32.xlu0 %v523_v45  ;;  %v528_v47 = vmul.f32 %v523_v45, %v523_v45 }
 0x20b   :  { %529 = vadd.xlane.f32.xlu0 %v528_v47 }
 0x290   :  { %v527_v48 = vpop.xlane.xlu0 %526 }
 0x291   :  { %v531_v49 = vmul.f32 0.0078125, %v527_v48 }
 0x293   :  { %v533_v51 = vmul.f32 %v531_v49, %v531_v49  ;;  %v537_v57 = vsub.f32 %v523_v45, %v531_v49 }
 0x294   :  { %v530_v50 = vpop.xlane.xlu0 %529 }
 0x295   :  { %v532_v52 = vmul.f32 0.0078125, %v530_v50 }
 0x297   :  { %v534_v53 = vsub.f32 %v532_v52, %v533_v51 }
 0x299   :  { %v535_v54 = vadd.f32 1e-05, %v534_v53 }
 0x29b   :  { %659 = vrsqrt.f32 %v535_v54 }
 0x2a8   :  { %v660_v56 = vpop.eup %659 }
 0x2a9   :  { %v545_v58 = vmul.f32 %v660_v56, %v573_v55 }
 0x2ab   :  { %v546_v60 = vmul.f32 %v545_v58, %v537_v57 }
 0x2ad   :  { %v554_v61 = vadd.f32 %v574_v59, %v546_v60 }
 0x2af   :  { %555 = vst [vmem:[#allocation8] sm:$0xff] %v554_v61 }
 0x2b0   :  { %732 = shalt.err (!%p729_p5)
}
 0x2b1   :  { %565 = dma.vmem_to_hbm [thread:$0]  %s563_s24, 128, %s832_s7, [#allocation4]  }
 0x2b2   :  { %745 = dma.done.wait [#allocation4], 128  }
 0x2b3   :  { %746 = vsyncadd [#allocation4], 4294967168 }
 0x2b4   :  { %569 = vsyncpa [#allocation3], 1 }
 0x2b5   :  { %570 = vsyncpa [#allocation6], 1 }
 0x2b6   :  { %571 = vsyncpa [#allocation4], 1 }

</bundles_post_ra>
